<compile_context>
chip_gen: v5e
topology: v5e:2x2
jax: 0.10.0
libtpu: 0.0.40
codegen_flags: <defaults>
</compile_context>

<pallas_src>
import functools
import math

import jax
import jax.numpy as jnp
from jax import lax
from jax.experimental import pallas as pl
from jax.experimental.pallas import tpu as pltpu


def _mha_kernel(q_ref, k_ref, v_ref, wq_ref, wk_ref, wv_ref, wo_ref, o_ref,
                kproj_ref, vproj_ref, ctx_ref,
                *, num_heads, d_k, d_v, compute_dtype):
    cdt = compute_dtype
    inv_sqrt_dk = 1.0 / math.sqrt(d_k)

    # ---- K/V projections: query-tile-invariant, run once per batch element.
    # (The query-tile axis is the innermost, sequential "arbitrary" grid axis,
    # so i == 0 runs first for every b; the scratch then serves all tiles.)
    @pl.when(pl.program_id(1) == 0)
    def _project_kv():
        xk = k_ref[0].astype(cdt)                                    # (S, Dm)
        xv = v_ref[0].astype(cdt)                                    # (S, Dm)
        kproj_ref[...] = jnp.dot(
            xk, wk_ref[...], preferred_element_type=jnp.float32).astype(cdt)
        vproj_ref[...] = jnp.dot(
            xv, wv_ref[...], preferred_element_type=jnp.float32).astype(cdt)

    # ---- Q projection for this query tile (stacked over heads, lane-dense).
    xq = q_ref[0].astype(cdt)                                        # (tq, Dm)
    q_all = jnp.dot(xq, wq_ref[...], preferred_element_type=jnp.float32)
    # Fold 1/sqrt(d_k) into Q; one wide cast, hoisted out of the head loop.
    q_all = (q_all * inv_sqrt_dk).astype(cdt)                        # (tq, H*Dk)

    k_all = kproj_ref[...]                                           # (S, H*Dk)
    v_all = vproj_ref[...]                                           # (S, H*Dv)

    for h in range(num_heads):        # small static head loop (fully unrolled)
        q_h = q_all[:, h * d_k:(h + 1) * d_k]
        k_h = k_all[:, h * d_k:(h + 1) * d_k]
        v_h = v_all[:, h * d_v:(h + 1) * d_v]

        # Contract last dims of Q and K directly: no explicit K transpose.
        s = lax.dot_general(q_h, k_h, (((1,), (1,)), ((), ())),
                            preferred_element_type=jnp.float32)      # (tq, S)

        # TODO(synk): the optional `mask` argument of the PyTorch forward is
        # not wired in (this reproduces the mask=None path exactly).

        # Numerically-stable softmax statistics in f32.  Normalization is
        # deferred until after P@V so the broadcast multiply touches a
        # (tq, d_v) tile instead of the (tq, S) probability matrix.
        s = s - jnp.max(s, axis=-1, keepdims=True)
        p = jnp.exp(s)
        denom = jnp.sum(p, axis=-1, keepdims=True)                   # (tq, 1)

        head = jnp.dot(p.astype(cdt), v_h,
                       preferred_element_type=jnp.float32)           # (tq, d_v)
        head = head * pl.reciprocal(denom, approx=True)

        # Place this head at its lane offset in the ctx scratch (replaces the
        # previous jnp.concatenate, which forced lane shuffles every step).
        ctx_ref[:, h * d_v:(h + 1) * d_v] = head.astype(cdt)

    # Fused, lane-dense output projection over the concatenated heads
    # (mathematically identical to torch.cat(..., -1) followed by Wo).
    out = jnp.dot(ctx_ref[...], wo_ref[...], preferred_element_type=jnp.float32)
    o_ref[0] = out.astype(o_ref.dtype)


def multi_head_attention(queries, keys, values, wq, wk, wv, wo, *,
                         block_q=None, compute_dtype=jnp.bfloat16):
    """queries/keys/values: [B, S, d_model]; wq/wk: [H, d_model, d_k];
    wv: [H, d_model, d_v]; wo: [H, d_v, d_model]. Returns [B, S, d_model]."""
    B, S, Dm = queries.shape
    H, _, Dk = wq.shape
    Dv = wv.shape[-1]

    if block_q is None:
        block_q = min(S, 256)
    assert S % block_q == 0, "block_q must divide S"
    assert block_q % 8 == 0 or block_q == S, "block_q must be sublane-aligned"
    nq = S // block_q

    # NOTE: best performance when Dm, H*Dk, H*Dv are multiples of 128
    # (lane-dense stores / unmasked slices); other shapes remain correct.

    # Lane-dense stacked weight layout (host-side plumbing, outside the kernel):
    #   x @ wq_flat[:, h*Dk:(h+1)*Dk] == x @ wq[h]
    wq_flat = jnp.transpose(wq, (1, 0, 2)).reshape(Dm, H * Dk).astype(compute_dtype)
    wk_flat = jnp.transpose(wk, (1, 0, 2)).reshape(Dm, H * Dk).astype(compute_dtype)
    wv_flat = jnp.transpose(wv, (1, 0, 2)).reshape(Dm, H * Dv).astype(compute_dtype)
    wo_flat = wo.reshape(H * Dv, Dm).astype(compute_dtype)

    kernel = functools.partial(_mha_kernel, num_heads=H, d_k=Dk, d_v=Dv,
                               compute_dtype=compute_dtype)

    # Grid-invariant (or batch-only-varying) blocks: single-buffer them.
    single_buf = pl.Buffered(1)

    # TODO(synk): for very long S (>~2-4K) K/V should additionally be tiled
    # with a flash-style online-softmax accumulator so per-step VMEM becomes
    # independent of S; here K/V are resident per batch element and only the
    # query axis is tiled.
    grid_spec = pltpu.PrefetchScalarGridSpec(
        num_scalar_prefetch=0,
        grid=(B, nq),
        in_specs=[
            pl.BlockSpec((1, block_q, Dm), lambda b, i: (b, i, 0)),   # queries
            pl.BlockSpec((1, S, Dm), lambda b, i: (b, 0, 0),
                         pipeline_mode=single_buf),                   # keys
            pl.BlockSpec((1, S, Dm), lambda b, i: (b, 0, 0),
                         pipeline_mode=single_buf),                   # values
            pl.BlockSpec((Dm, H * Dk), lambda b, i: (0, 0),
                         pipeline_mode=single_buf),                   # Wq (stacked)
            pl.BlockSpec((Dm, H * Dk), lambda b, i: (0, 0),
                         pipeline_mode=single_buf),                   # Wk (stacked)
            pl.BlockSpec((Dm, H * Dv), lambda b, i: (0, 0),
                         pipeline_mode=single_buf),                   # Wv (stacked)
            pl.BlockSpec((H * Dv, Dm), lambda b, i: (0, 0),
                         pipeline_mode=single_buf),                   # Wo (flat)
        ],
        out_specs=pl.BlockSpec((1, block_q, Dm), lambda b, i: (b, i, 0)),
        scratch_shapes=[
            pltpu.VMEM((S, H * Dk), compute_dtype),        # cached K projections
            pltpu.VMEM((S, H * Dv), compute_dtype),        # cached V projections
            pltpu.VMEM((block_q, H * Dv), compute_dtype),  # concatenated heads
        ],
    )

    act_item = queries.dtype.itemsize
    w_item = jnp.dtype(compute_dtype).itemsize
    w_bytes = (2 * Dm * H * Dk + Dm * H * Dv + H * Dv * Dm) * w_item

    # Advisory cost estimate so XLA can overlap/schedule the custom call.
    # K/V projection FLOPs now happen once per batch element (not per tile).
    proj_kv_flops = 2 * S * Dm * H * (Dk + Dv)
    per_tile_flops = (2 * block_q * Dm * H * Dk            # Q projection
                      + H * 2 * block_q * S * (Dk + Dv)    # scores + P@V
                      + 2 * block_q * H * Dv * Dm)         # output projection
    cost = pl.CostEstimate(
        flops=int(B * (proj_kv_flops + nq * per_tile_flops)),
        transcendentals=int(B * H * S * S),
        bytes_accessed=int(B * 3 * S * Dm * act_item       # q, k, v reads
                           + w_bytes                       # weights
                           + B * S * Dm * act_item))       # output write

    # VMEM budget: single-buffered K/V/weight blocks, double-buffered Q/out
    # blocks, cached K/V projection + ctx scratch, and f32 intermediates
    # (casted xq/xk/xv, stacked q_all, per-head scores, output tile).
    resident = (2 * S * Dm * act_item                       # K, V blocks (1 buf)
                + w_bytes                                   # weights (1 buf)
                + S * H * (Dk + Dv) * w_item                # cached projections
                + block_q * H * Dv * w_item)                # ctx scratch
    per_step = (2 * 2 * block_q * Dm * act_item             # Q in + out (2 bufs)
                + 4 * (block_q * (H * Dk + Dm + 2 * S)      # q_all, out, scores
                       + (2 * S + block_q) * Dm))           # casted xk/xv/xq
    try:
        info = pltpu.get_tpu_info()
    except Exception:
        info = None
    vmem_cap = getattr(info, "vmem_capacity_bytes", None) or (64 * 2 ** 20)
    vmem_limit = int(min(max(int(1.5 * (resident + per_step)), 32 * 2 ** 20),
                         int(0.85 * vmem_cap)))

    return pl.pallas_call(
        kernel,
        out_shape=jax.ShapeDtypeStruct((B, S, Dm), queries.dtype),
        grid_spec=grid_spec,
        compiler_params=pltpu.CompilerParams(
            # Batch axis parallel (2-TC sharding); query-tile axis arbitrary so
            # the per-batch K/V projection cache is populated at i == 0.
            dimension_semantics=("parallel", "arbitrary"),
            vmem_limit_bytes=vmem_limit),
        cost_estimate=cost,
    )(queries, keys, values, wq_flat, wk_flat, wv_flat, wo_flat)


def _reference(queries, keys, values, wq, wk, wv, wo):
    """Pure-JAX reference mirroring the PyTorch module (mask=None)."""
    outs = []
    H = wq.shape[0]
    for h in range(H):
        q = queries @ wq[h]
        k = keys @ wk[h]
        v = values @ wv[h]
        dk = k.shape[-1]
        s = jnp.einsum("bqd,bkd->bqk", q, k) / math.sqrt(dk)
        w = jax.nn.softmax(s, axis=-1)
        outs.append(jnp.einsum("bqk,bkd->bqd", w, v) @ wo[h])
    return sum(outs)


if __name__ == "__main__":
    # Small shapes consistent with the module; chosen lane-dense
    # (d_model = H*d_k = H*d_v = 128) so output stores are unmasked.
    B, S, Dm = 2, 16, 128
    H, Dk, Dv = 4, 32, 32

    key = jax.random.PRNGKey(0)
    kq, kk, kv, kwq, kwk, kwv, kwo = jax.random.split(key, 7)

    queries = jax.random.normal(kq, (B, S, Dm), dtype=jnp.float32)
    keys = jax.random.normal(kk, (B, S, Dm), dtype=jnp.float32)
    values = jax.random.normal(kv, (B, S, Dm), dtype=jnp.float32)

    # PyTorch nn.Linear(bias=False) init, stored transposed for x @ W.
    scale = 1.0 / math.sqrt(Dm)
    wq = jax.random.uniform(kwq, (H, Dm, Dk), jnp.float32, -scale, scale)
    wk = jax.random.uniform(kwk, (H, Dm, Dk), jnp.float32, -scale, scale)
    wv = jax.random.uniform(kwv, (H, Dm, Dv), jnp.float32, -scale, scale)
    wo_scale = 1.0 / math.sqrt(H * Dv)
    wo = jax.random.uniform(kwo, (H, Dv, Dm), jnp.float32, -wo_scale, wo_scale)

    ref = _reference(queries, keys, values, wq, wk, wv, wo)

    # f32-compute path (tight check; approx EUP reciprocal applied to the
    # (tq, d_v) head output only, so its error contribution is small).
    out_f32 = multi_head_attention(queries, keys, values, wq, wk, wv, wo,
                                   compute_dtype=jnp.float32)
    out_f32 = jax.block_until_ready(out_f32)
    assert out_f32.shape == (B, S, Dm)
    assert jnp.allclose(out_f32, ref, atol=5e-3, rtol=5e-3), "f32 path mismatch"

    # bf16-matmul / f32-accumulate fast path (v6e/v7x MXU; f32 softmax stats).
    out_bf16 = multi_head_attention(queries, keys, values, wq, wk, wv, wo,
                                    compute_dtype=jnp.bfloat16)
    out_bf16 = jax.block_until_ready(out_bf16)
    assert jnp.allclose(out_bf16, ref, atol=3e-2, rtol=3e-2), "bf16 path mismatch"

    print("KERNEL_OK")
</pallas_src>

<mosaic_0001>
module attributes {stable_mosaic.version = 11 : i64} {
  func.func @_mha_kernel(%arg0: i32, %arg1: i32, %arg2: memref<1x16x128xf32, #tpu.memory_space<vmem>>, %arg3: memref<1x16x128xf32, #tpu.memory_space<vmem>>, %arg4: memref<1x16x128xf32, #tpu.memory_space<vmem>>, %arg5: memref<128x128xf32, #tpu.memory_space<vmem>>, %arg6: memref<128x128xf32, #tpu.memory_space<vmem>>, %arg7: memref<128x128xf32, #tpu.memory_space<vmem>>, %arg8: memref<128x128xf32, #tpu.memory_space<vmem>>, %arg9: memref<1x16x128xf32, #tpu.memory_space<vmem>>, %arg10: memref<16x128xf32, #tpu.memory_space<vmem>>, %arg11: memref<16x128xf32, #tpu.memory_space<vmem>>, %arg12: memref<16x128xf32, #tpu.memory_space<vmem>>) attributes {dimension_semantics = [#tpu.dimension_semantics<parallel>, #tpu.dimension_semantics<arbitrary>], iteration_bounds = array<i64: 2, 1>, scalar_prefetch = 0 : i64, scratch_operands = 3 : i64, tpu.core_type = #tpu.core_type<tc>, window_params = [{transform_indices = @transform_0, window_bounds = array<i64: 1, 16, 128>}, {pipeline_mode = #tpu.pipeline_mode<synchronous>, transform_indices = @transform_1, window_bounds = array<i64: 1, 16, 128>}, {pipeline_mode = #tpu.pipeline_mode<synchronous>, transform_indices = @transform_2, window_bounds = array<i64: 1, 16, 128>}, {pipeline_mode = #tpu.pipeline_mode<synchronous>, transform_indices = @transform_3, window_bounds = array<i64: 128, 128>}, {pipeline_mode = #tpu.pipeline_mode<synchronous>, transform_indices = @transform_4, window_bounds = array<i64: 128, 128>}, {pipeline_mode = #tpu.pipeline_mode<synchronous>, transform_indices = @transform_5, window_bounds = array<i64: 128, 128>}, {pipeline_mode = #tpu.pipeline_mode<synchronous>, transform_indices = @transform_6, window_bounds = array<i64: 128, 128>}, {transform_indices = @transform_7, window_bounds = array<i64: 1, 16, 128>}]} {
    %c0_i32 = arith.constant 0 : i32
    %0 = arith.cmpi eq, %arg1, %c0_i32 : i32
    %1 = arith.extui %0 : i1 to i32
    %c0_i32_0 = arith.constant 0 : i32
    %2 = arith.cmpi ne, %1, %c0_i32_0 : i32
    scf.if %2 {
      %c0_39 = arith.constant 0 : index
      %c0_40 = arith.constant 0 : index
      %c0_41 = arith.constant 0 : index
      %81 = vector.load %arg3[%c0_39, %c0_40, %c0_41] : memref<1x16x128xf32, #tpu.memory_space<vmem>>, vector<1x16x128xf32>
      %82 = vector.shape_cast %81 : vector<1x16x128xf32> to vector<16x128xf32>
      %c0_42 = arith.constant 0 : index
      %c0_43 = arith.constant 0 : index
      %c0_44 = arith.constant 0 : index
      %83 = vector.load %arg4[%c0_42, %c0_43, %c0_44] : memref<1x16x128xf32, #tpu.memory_space<vmem>>, vector<1x16x128xf32>
      %84 = vector.shape_cast %83 : vector<1x16x128xf32> to vector<16x128xf32>
      %c0_45 = arith.constant 0 : index
      %c0_46 = arith.constant 0 : index
      %85 = vector.load %arg6[%c0_45, %c0_46] : memref<128x128xf32, #tpu.memory_space<vmem>>, vector<128x128xf32>
      %cst_47 = arith.constant dense<0.000000e+00> : vector<16x128xf32>
      %86 = tpu.matmul %82, %85, %cst_47 {dimension_numbers = #tpu.dot_dimension_numbers<[1], [0], [0], [1], [0, 0, 1, 1], [], []>} : vector<16x128xf32>, vector<128x128xf32>, vector<16x128xf32> -> vector<16x128xf32>
      %c0_48 = arith.constant 0 : index
      %c0_49 = arith.constant 0 : index
      %87 = vector.load %arg10[%c0_48, %c0_49] : memref<16x128xf32, #tpu.memory_space<vmem>>, vector<16x128xf32>
      tpu.vector_store %arg10[%c0_48, %c0_49], %86 {strides = array<i32>} : memref<16x128xf32, #tpu.memory_space<vmem>>, vector<16x128xf32>,
      %c0_50 = arith.constant 0 : index
      %c0_51 = arith.constant 0 : index
      %88 = vector.load %arg7[%c0_50, %c0_51] : memref<128x128xf32, #tpu.memory_space<vmem>>, vector<128x128xf32>
      %cst_52 = arith.constant dense<0.000000e+00> : vector<16x128xf32>
      %89 = tpu.matmul %84, %88, %cst_52 {dimension_numbers = #tpu.dot_dimension_numbers<[1], [0], [0], [1], [0, 0, 1, 1], [], []>} : vector<16x128xf32>, vector<128x128xf32>, vector<16x128xf32> -> vector<16x128xf32>
      %c0_53 = arith.constant 0 : index
      %c0_54 = arith.constant 0 : index
      %90 = vector.load %arg11[%c0_53, %c0_54] : memref<16x128xf32, #tpu.memory_space<vmem>>, vector<16x128xf32>
      tpu.vector_store %arg11[%c0_53, %c0_54], %89 {strides = array<i32>} : memref<16x128xf32, #tpu.memory_space<vmem>>, vector<16x128xf32>,
    } else {
    }
    %c0 = arith.constant 0 : index
    %c0_1 = arith.constant 0 : index
    %c0_2 = arith.constant 0 : index
    %3 = vector.load %arg2[%c0, %c0_1, %c0_2] : memref<1x16x128xf32, #tpu.memory_space<vmem>>, vector<1x16x128xf32>
    %4 = vector.shape_cast %3 : vector<1x16x128xf32> to vector<16x128xf32>
    %c0_3 = arith.constant 0 : index
    %c0_4 = arith.constant 0 : index
    %5 = vector.load %arg5[%c0_3, %c0_4] : memref<128x128xf32, #tpu.memory_space<vmem>>, vector<128x128xf32>
    %cst = arith.constant dense<0.000000e+00> : vector<16x128xf32>
    %6 = tpu.matmul %4, %5, %cst {dimension_numbers = #tpu.dot_dimension_numbers<[1], [0], [0], [1], [0, 0, 1, 1], [], []>} : vector<16x128xf32>, vector<128x128xf32>, vector<16x128xf32> -> vector<16x128xf32>
    %cst_5 = arith.constant 0.176776692 : f32
    %7 = vector.broadcast %cst_5 : f32 to vector<16x128xf32>
    %8 = arith.mulf %6, %7 : vector<16x128xf32>
    %c0_6 = arith.constant 0 : index
    %c0_7 = arith.constant 0 : index
    %9 = vector.load %arg10[%c0_6, %c0_7] : memref<16x128xf32, #tpu.memory_space<vmem>>, vector<16x128xf32>
    %c0_8 = arith.constant 0 : index
    %c0_9 = arith.constant 0 : index
    %10 = vector.load %arg11[%c0_8, %c0_9] : memref<16x128xf32, #tpu.memory_space<vmem>>, vector<16x128xf32>
    %11 = vector.extract_strided_slice %8 {offsets = [0, 0], sizes = [16, 32], strides = [1, 1]} : vector<16x128xf32> to vector<16x32xf32>
    %12 = vector.extract_strided_slice %9 {offsets = [0, 0], sizes = [16, 32], strides = [1, 1]} : vector<16x128xf32> to vector<16x32xf32>
    %13 = vector.extract_strided_slice %10 {offsets = [0, 0], sizes = [16, 32], strides = [1, 1]} : vector<16x128xf32> to vector<16x32xf32>
    %cst_10 = arith.constant dense<0.000000e+00> : vector<16x16xf32>
    %14 = tpu.matmul %11, %12, %cst_10 {dimension_numbers = #tpu.dot_dimension_numbers<[1], [1], [0], [0], [0, 0, 1, 0], [], []>} : vector<16x32xf32>, vector<16x32xf32>, vector<16x16xf32> -> vector<16x16xf32>
    %cst_11 = arith.constant dense<0xFF800000> : vector<16xf32>
    %15 = vector.multi_reduction <maximumf>, %14, %cst_11 [1] : vector<16x16xf32> to vector<16xf32>
    %16 = vector.shape_cast %15 : vector<16xf32> to vector<16x1xf32>
    %17 = vector.broadcast %16 : vector<16x1xf32> to vector<16x16xf32>
    %18 = arith.subf %14, %17 : vector<16x16xf32>
    %19 = math.exp %18 : vector<16x16xf32>
    %cst_12 = arith.constant dense<0.000000e+00> : vector<16xf32>
    %20 = vector.multi_reduction <add>, %19, %cst_12 [1] : vector<16x16xf32> to vector<16xf32>
    %21 = vector.shape_cast %20 : vector<16xf32> to vector<16x1xf32>
    %cst_13 = arith.constant dense<0.000000e+00> : vector<16x32xf32>
    %22 = tpu.matmul %19, %13, %cst_13 {dimension_numbers = #tpu.dot_dimension_numbers<[1], [0], [0], [1], [0, 0, 1, 1], [], []>} : vector<16x16xf32>, vector<16x32xf32>, vector<16x32xf32> -> vector<16x32xf32>
    %23 = tpu.reciprocal %21 {approx = true} : vector<16x1xf32> -> vector<16x1xf32>
    %24 = vector.broadcast %23 : vector<16x1xf32> to vector<16x32xf32>
    %25 = arith.mulf %22, %24 : vector<16x32xf32>
    %c0_14 = arith.constant 0 : index
    %c0_15 = arith.constant 0 : index
    %26 = vector.load %arg12[%c0_14, %c0_15] : memref<16x128xf32, #tpu.memory_space<vmem>>, vector<16x32xf32>
    tpu.vector_store %arg12[%c0_14, %c0_15], %25 {strides = array<i32>} : memref<16x128xf32, #tpu.memory_space<vmem>>, vector<16x32xf32>,
    %27 = vector.extract_strided_slice %8 {offsets = [0, 32], sizes = [16, 32], strides = [1, 1]} : vector<16x128xf32> to vector<16x32xf32>
    %28 = vector.extract_strided_slice %9 {offsets = [0, 32], sizes = [16, 32], strides = [1, 1]} : vector<16x128xf32> to vector<16x32xf32>
    %29 = vector.extract_strided_slice %10 {offsets = [0, 32], sizes = [16, 32], strides = [1, 1]} : vector<16x128xf32> to vector<16x32xf32>
    %cst_16 = arith.constant dense<0.000000e+00> : vector<16x16xf32>
    %30 = tpu.matmul %27, %28, %cst_16 {dimension_numbers = #tpu.dot_dimension_numbers<[1], [1], [0], [0], [0, 0, 1, 0], [], []>} : vector<16x32xf32>, vector<16x32xf32>, vector<16x16xf32> -> vector<16x16xf32>
    %cst_17 = arith.constant dense<0xFF800000> : vector<16xf32>
    %31 = vector.multi_reduction <maximumf>, %30, %cst_17 [1] : vector<16x16xf32> to vector<16xf32>
    %32 = vector.shape_cast %31 : vector<16xf32> to vector<16x1xf32>
    %33 = vector.broadcast %32 : vector<16x1xf32> to vector<16x16xf32>
    %34 = arith.subf %30, %33 : vector<16x16xf32>
    %35 = math.exp %34 : vector<16x16xf32>
    %cst_18 = arith.constant dense<0.000000e+00> : vector<16xf32>
    %36 = vector.multi_reduction <add>, %35, %cst_18 [1] : vector<16x16xf32> to vector<16xf32>
    %37 = vector.shape_cast %36 : vector<16xf32> to vector<16x1xf32>
    %cst_19 = arith.constant dense<0.000000e+00> : vector<16x32xf32>
    %38 = tpu.matmul %35, %29, %cst_19 {dimension_numbers = #tpu.dot_dimension_numbers<[1], [0], [0], [1], [0, 0, 1, 1], [], []>} : vector<16x16xf32>, vector<16x32xf32>, vector<16x32xf32> -> vector<16x32xf32>
    %39 = tpu.reciprocal %37 {approx = true} : vector<16x1xf32> -> vector<16x1xf32>
    %40 = vector.broadcast %39 : vector<16x1xf32> to vector<16x32xf32>
    %41 = arith.mulf %38, %40 : vector<16x32xf32>
    %c0_20 = arith.constant 0 : index
    %c32 = arith.constant 32 : index
    %42 = vector.load %arg12[%c0_20, %c32] : memref<16x128xf32, #tpu.memory_space<vmem>>, vector<16x32xf32>
    tpu.vector_store %arg12[%c0_20, %c32], %41 {strides = array<i32>} : memref<16x128xf32, #tpu.memory_space<vmem>>, vector<16x32xf32>,
    %43 = vector.extract_strided_slice %8 {offsets = [0, 64], sizes = [16, 32], strides = [1, 1]} : vector<16x128xf32> to vector<16x32xf32>
    %44 = vector.extract_strided_slice %9 {offsets = [0, 64], sizes = [16, 32], strides = [1, 1]} : vector<16x128xf32> to vector<16x32xf32>
    %45 = vector.extract_strided_slice %10 {offsets = [0, 64], sizes = [16, 32], strides = [1, 1]} : vector<16x128xf32> to vector<16x32xf32>
    %cst_21 = arith.constant dense<0.000000e+00> : vector<16x16xf32>
    %46 = tpu.matmul %43, %44, %cst_21 {dimension_numbers = #tpu.dot_dimension_numbers<[1], [1], [0], [0], [0, 0, 1, 0], [], []>} : vector<16x32xf32>, vector<16x32xf32>, vector<16x16xf32> -> vector<16x16xf32>
    %cst_22 = arith.constant dense<0xFF800000> : vector<16xf32>
    %47 = vector.multi_reduction <maximumf>, %46, %cst_22 [1] : vector<16x16xf32> to vector<16xf32>
    %48 = vector.shape_cast %47 : vector<16xf32> to vector<16x1xf32>
    %49 = vector.broadcast %48 : vector<16x1xf32> to vector<16x16xf32>
    %50 = arith.subf %46, %49 : vector<16x16xf32>
    %51 = math.exp %50 : vector<16x16xf32>
    %cst_23 = arith.constant dense<0.000000e+00> : vector<16xf32>
    %52 = vector.multi_reduction <add>, %51, %cst_23 [1] : vector<16x16xf32> to vector<16xf32>
    %53 = vector.shape_cast %52 : vector<16xf32> to vector<16x1xf32>
    %cst_24 = arith.constant dense<0.000000e+00> : vector<16x32xf32>
    %54 = tpu.matmul %51, %45, %cst_24 {dimension_numbers = #tpu.dot_dimension_numbers<[1], [0], [0], [1], [0, 0, 1, 1], [], []>} : vector<16x16xf32>, vector<16x32xf32>, vector<16x32xf32> -> vector<16x32xf32>
    %55 = tpu.reciprocal %53 {approx = true} : vector<16x1xf32> -> vector<16x1xf32>
    %56 = vector.broadcast %55 : vector<16x1xf32> to vector<16x32xf32>
    %57 = arith.mulf %54, %56 : vector<16x32xf32>
    %c0_25 = arith.constant 0 : index
    %c64 = arith.constant 64 : index
    %58 = vector.load %arg12[%c0_25, %c64] : memref<16x128xf32, #tpu.memory_space<vmem>>, vector<16x32xf32>
    tpu.vector_store %arg12[%c0_25, %c64], %57 {strides = array<i32>} : memref<16x128xf32, #tpu.memory_space<vmem>>, vector<16x32xf32>,
    %59 = vector.extract_strided_slice %8 {offsets = [0, 96], sizes = [16, 32], strides = [1, 1]} : vector<16x128xf32> to vector<16x32xf32>
    %60 = vector.extract_strided_slice %9 {offsets = [0, 96], sizes = [16, 32], strides = [1, 1]} : vector<16x128xf32> to vector<16x32xf32>
    %61 = vector.extract_strided_slice %10 {offsets = [0, 96], sizes = [16, 32], strides = [1, 1]} : vector<16x128xf32> to vector<16x32xf32>
    %cst_26 = arith.constant dense<0.000000e+00> : vector<16x16xf32>
    %62 = tpu.matmul %59, %60, %cst_26 {dimension_numbers = #tpu.dot_dimension_numbers<[1], [1], [0], [0], [0, 0, 1, 0], [], []>} : vector<16x32xf32>, vector<16x32xf32>, vector<16x16xf32> -> vector<16x16xf32>
    %cst_27 = arith.constant dense<0xFF800000> : vector<16xf32>
    %63 = vector.multi_reduction <maximumf>, %62, %cst_27 [1] : vector<16x16xf32> to vector<16xf32>
    %64 = vector.shape_cast %63 : vector<16xf32> to vector<16x1xf32>
    %65 = vector.broadcast %64 : vector<16x1xf32> to vector<16x16xf32>
    %66 = arith.subf %62, %65 : vector<16x16xf32>
    %67 = math.exp %66 : vector<16x16xf32>
    %cst_28 = arith.constant dense<0.000000e+00> : vector<16xf32>
    %68 = vector.multi_reduction <add>, %67, %cst_28 [1] : vector<16x16xf32> to vector<16xf32>
    %69 = vector.shape_cast %68 : vector<16xf32> to vector<16x1xf32>
    %cst_29 = arith.constant dense<0.000000e+00> : vector<16x32xf32>
    %70 = tpu.matmul %67, %61, %cst_29 {dimension_numbers = #tpu.dot_dimension_numbers<[1], [0], [0], [1], [0, 0, 1, 1], [], []>} : vector<16x16xf32>, vector<16x32xf32>, vector<16x32xf32> -> vector<16x32xf32>
    %71 = tpu.reciprocal %69 {approx = true} : vector<16x1xf32> -> vector<16x1xf32>
    %72 = vector.broadcast %71 : vector<16x1xf32> to vector<16x32xf32>
    %73 = arith.mulf %70, %72 : vector<16x32xf32>
    %c0_30 = arith.constant 0 : index
    %c96 = arith.constant 96 : index
    %74 = vector.load %arg12[%c0_30, %c96] : memref<16x128xf32, #tpu.memory_space<vmem>>, vector<16x32xf32>
    tpu.vector_store %arg12[%c0_30, %c96], %73 {strides = array<i32>} : memref<16x128xf32, #tpu.memory_space<vmem>>, vector<16x32xf32>,
    %c0_31 = arith.constant 0 : index
    %c0_32 = arith.constant 0 : index
    %75 = vector.load %arg12[%c0_31, %c0_32] : memref<16x128xf32, #tpu.memory_space<vmem>>, vector<16x128xf32>
    %c0_33 = arith.constant 0 : index
    %c0_34 = arith.constant 0 : index
    %76 = vector.load %arg8[%c0_33, %c0_34] : memref<128x128xf32, #tpu.memory_space<vmem>>, vector<128x128xf32>
    %cst_35 = arith.constant dense<0.000000e+00> : vector<16x128xf32>
    %77 = tpu.matmul %75, %76, %cst_35 {dimension_numbers = #tpu.dot_dimension_numbers<[1], [0], [0], [1], [0, 0, 1, 1], [], []>} : vector<16x128xf32>, vector<128x128xf32>, vector<16x128xf32> -> vector<16x128xf32>
    %c0_36 = arith.constant 0 : index
    %c0_37 = arith.constant 0 : index
    %c0_38 = arith.constant 0 : index
    %78 = vector.load %arg9[%c0_36, %c0_37, %c0_38] : memref<1x16x128xf32, #tpu.memory_space<vmem>>, vector<1x16x128xf32>
    %79 = vector.shape_cast %78 : vector<1x16x128xf32> to vector<16x128xf32>
    %80 = vector.shape_cast %77 : vector<16x128xf32> to vector<1x16x128xf32>
    tpu.vector_store %arg9[%c0_36, %c0_37, %c0_38], %80 {strides = array<i32>} : memref<1x16x128xf32, #tpu.memory_space<vmem>>, vector<1x16x128xf32>,
    return
  }
  func.func @transform_0(%arg0: i32, %arg1: i32) -> (i32, i32, i32) {
    %c0_i32 = arith.constant 0 : i32
    %c0_i32_0 = arith.constant 0 : i32
    return %arg0, %arg1, %c0_i32 : i32, i32, i32
  }
  func.func @transform_1(%arg0: i32, %arg1: i32) -> (i32, i32, i32) {
    %c0_i32 = arith.constant 0 : i32
    %c0_i32_0 = arith.constant 0 : i32
    %c0_i32_1 = arith.constant 0 : i32
    return %arg0, %c0_i32, %c0_i32_0 : i32, i32, i32
  }
  func.func @transform_2(%arg0: i32, %arg1: i32) -> (i32, i32, i32) {
    %c0_i32 = arith.constant 0 : i32
    %c0_i32_0 = arith.constant 0 : i32
    %c0_i32_1 = arith.constant 0 : i32
    return %arg0, %c0_i32, %c0_i32_0 : i32, i32, i32
  }
  func.func @transform_3(%arg0: i32, %arg1: i32) -> (i32, i32) {
    %c0_i32 = arith.constant 0 : i32
    %c0_i32_0 = arith.constant 0 : i32
    %c0_i32_1 = arith.constant 0 : i32
    return %c0_i32, %c0_i32_0 : i32, i32
  }
  func.func @transform_4(%arg0: i32, %arg1: i32) -> (i32, i32) {
    %c0_i32 = arith.constant 0 : i32
    %c0_i32_0 = arith.constant 0 : i32
    %c0_i32_1 = arith.constant 0 : i32
    return %c0_i32, %c0_i32_0 : i32, i32
  }
  func.func @transform_5(%arg0: i32, %arg1: i32) -> (i32, i32) {
    %c0_i32 = arith.constant 0 : i32
    %c0_i32_0 = arith.constant 0 : i32
    %c0_i32_1 = arith.constant 0 : i32
    return %c0_i32, %c0_i32_0 : i32, i32
  }
  func.func @transform_6(%arg0: i32, %arg1: i32) -> (i32, i32) {
    %c0_i32 = arith.constant 0 : i32
    %c0_i32_0 = arith.constant 0 : i32
    %c0_i32_1 = arith.constant 0 : i32
    return %c0_i32, %c0_i32_0 : i32, i32
  }
  func.func @transform_7(%arg0: i32, %arg1: i32) -> (i32, i32, i32) {
    %c0_i32 = arith.constant 0 : i32
    %c0_i32_0 = arith.constant 0 : i32
    return %arg0, %arg1, %c0_i32 : i32, i32, i32
  }
}

</mosaic_0001>

<bundles_post_ra>
// kernel: tpu_custom_call.1
= control target key start
LH: loop header
LB: loop body
LE: loop exit
PB: predicated region body
PF: predicated region fallthrough
CT: control target
= control target key end

     0   :  { %s2107_s0 = inlined_call_operand.hbm [shape: f32[2,16,128], index: 0, kind: input, shape index: {}]   ;;  %s2108_s1 = inlined_call_operand.hbm [shape: f32[2,16,128], index: 1, kind: input, shape index: {}]   ;;  %s2109_s2 = inlined_call_operand.hbm [shape: f32[2,16,128], index: 2, kind: input, shape index: {}]   ;;  %s2110_s3 = inlined_call_operand.hbm [shape: f32[128,128], index: 3, kind: input, shape index: {}]   ;;  %s2111_s4 = inlined_call_operand.hbm [shape: f32[128,128], index: 4, kind: input, shape index: {}]   ;;  %s2112_s5 = inlined_call_operand.hbm [shape: f32[128,128], index: 5, kind: input, shape index: {}]   ;;  %s2113_s6 = inlined_call_operand.hbm [shape: f32[128,128], index: 6, kind: input, shape index: {}]   ;;  %s2114_s7 = inlined_call_operand.hbm [shape: f32[2,16,128], index: 7, kind: output, shape index: {}]  }
   0x1   :  { %2119 = sst [smem:[#allocation25_spill]] %s2108_s1 }
   0x2   :  { %2120 = sst [smem:[#allocation26_spill]] %s2110_s3 }
   0x3   :  { %2121 = sst [smem:[#allocation27_spill]] %s2112_s5 }
   0x4   :  { %2122 = sst [smem:[#allocation28_spill]] %s2114_s7 }
   0x5   :  { %12 = vsyncpa [#allocation6], 0 }
   0x6   :  { %14 = vsyncpa [#allocation6 + $0x1], 0 }
   0x7   :  { %15 = vsyncpa [#allocation9], 0 }
   0x8   :  { %16 = vsyncpa [#allocation12], 0 }
   0x9   :  { %17 = vsyncpa [#allocation15], 0 }
   0xa   :  { %18 = vsyncpa [#allocation7], 0 }
   0xb   :  { %20 = vsyncpa [#allocation7 + $0x1], 0  ;;  %s1776_s24 = smov 0   ;;  %s1778_s25 = smov 0  }
   0xc   :  { %s1780_s26 = smov 0   ;;  %s1782_s27 = smov 0  }
   0xd   :  { %s1784_s28 = smov 0   ;;  %s1786_s29 = smov 0  }
   0xe LB: > { %2123 = sst [smem:[#allocation23_spill]] %s1701_s24  ;;  %s1193_s30 = sadd.s32 4294967295, %s1721_s29   ;;  %s1721_s29 = sphi %s1786_s29, %s26_s29   ;;  %s1717_s28 = sphi %s1784_s28, %s2147_s28   ;;  %s1713_s27 = sphi %s1782_s27, %s2146_s27   ;;  %s1709_s26 = sphi %s1780_s26, %s2145_s26   ;;  %s1705_s25 = sphi %s1778_s25, %s2144_s25   ;;  %s1701_s24 = sphi %s1776_s24, %s2143_s24  }
   0xf   : > { %s1194_s8 = sadd.s32 4294967294, %s1721_s29   ;;  %p60_p0 = scmp.ne.s32.totalorder %s1705_s25, %s1701_s24 }
  0x10   : > { %p1808_p1 = scmp.eq.s32.totalorder %s1193_s30, 0  ;;  %p1812_p2 = scmp.eq.s32.totalorder %s1193_s30, 1 }
  0x11   : > { %p228_p3 = scmp.eq.s32.totalorder %s1194_s8, 1  ;;  %p1195_p5 = scmp.ge.s32.totalorder %s1721_s29, 1 }
  0x12   : > { %p1818_p4 = por %p1808_p1, %p60_p0  ;;  %p235_p7 = scmp.lt.s32.totalorder %s1721_s29, 3 }
  0x13   : > { %p1823_p6 = por %p228_p3, %p60_p0  ;;  %s1828_s13 = sshll.u32 %s1713_s27, 4 }
  0x14   : > { %p1830_p8 = pnand %p1195_p5, %p235_p7  ;;  %s2130_s1 = sld [smem:[#allocation25_spill]] }
  0x15   : > { %s2127_s12 = scalar_select %p1823_p6, 1, 0 }
  0x16   : > { %s1723_s19 = smov [#allocation8]   ;;  %p2115_p9 = pneg %p1830_p8 }
  0x17   : > { %2128 = sst [smem:[#allocation24_spill]] %s2127_s12  ;;  %s251_s20 = sshll.u32 %s1723_s19, 4  ;;  %s252_s20 = int_to_ptr.vmem [resolvable:$true] %s251_s20 }
  0x18   : > { %p1845_p10 = pnand %p2115_p9, %p1818_p4  ;;  %s265_s27 = scalar_lea.hbm %s2109_s2, %s1828_s13 }
  0x19   : > { %s1853_s30 = sshll.u32 %s265_s27, 4  ;;  %s267_s30 = int_to_ptr.hbm [resolvable:$true] %s1853_s30 }
  0x1a   : > { %s248_s17 = scalar_lea.hbm %s2130_s1, %s1828_s13  ;;  %p1421_p12 = pneg %p1845_p10 }
  0x1b   : > { %s249_s18 = sshll.u32 %s248_s17, 4  ;;  %s1424_s19 = scalar_lea.hbm %s2130_s1, 32  ;;  %s250_s18 = int_to_ptr.hbm [resolvable:$true] %s249_s18 }
  0x1c   : > { %s1417_s8 = sshra.s32 %s250_s18, 4  ;;  %s1418_s8 = int_to_ptr.hbm [resolvable:$true] %s1417_s8 }
  0x1d   : > { %s1419_s15 = scalar_lea.hbm %s1418_s8, 16  ;;  %p1425_p3 = scmp.lt.s32.totalorder %s1418_s8, %s2130_s1 }
  0x1e   : > { %p1420_p11 = scmp.ne.s32.totalorder %s1418_s8, %s1419_s15  ;;  %p1426_p5 = scmp.lt.s32.totalorder %s1424_s19, %s1419_s15 }
  0x20   : > { %p1422_p13 = pnand %p1421_p12, %p1420_p11  ;;  %p1427_p7 = por %p1426_p5, %p1425_p3 }
  0x22   : > { %p1423_p0 = pneg %p1422_p13 }
  0x24   : > { %p1428_p9 = pnand %p1427_p7, %p1423_p0 }
  0x26   : > { %1431 = shalt.err (!%p1428_p9)
}
  0x27   : > { %s1724_s27 = smov 128   ;;  %s1725_s12 = smov 8  }
  0x28   : > { %1275 = dma.hbm_to_vmem [thread:$0]  (!%p1845_p10), %s250_s18, 256, %s252_s20, [#allocation9], %s1724_s27, %s1724_s27, %s1725_s12  }
  0x29   : > { %s2132_s3 = sld [smem:[#allocation26_spill]]  ;;  %s1726_s15 = smov [#allocation11]  }
  0x2a   : > { %s282_s19 = sshll.u32 %s1726_s15, 4  ;;  %p2133_p9 = pneg %p1830_p8  ;;  %s283_s19 = int_to_ptr.vmem [resolvable:$true] %s282_s19 }
  0x2b   : > { %s2135_s5 = sld [smem:[#allocation27_spill]]  ;;  %s1727_s16 = smov [#allocation14]  }
  0x2c   : > { %p1880_p13 = pnand %p2133_p9, %p1808_p1  ;;  %s310_s17 = sshll.u32 %s1727_s16, 4  ;;  %s311_s17 = int_to_ptr.vmem [resolvable:$true] %s310_s17 }
  0x2d   : > { %s1728_s15 = smov [#allocation10]   ;;  %s1514_s16 = scalar_lea.hbm %s2109_s2, 32 }
  0x2e   : > { %s268_s1 = sshll.u32 %s1728_s15, 4  ;;  %s269_s1 = int_to_ptr.vmem [resolvable:$true] %s268_s1 }
  0x2f   : > { %s280_s8 = sshll.u32 %s2132_s3, 4  ;;  %s294_s3 = sshll.u32 %s2111_s4, 4  ;;  %s281_s8 = int_to_ptr.hbm [resolvable:$true] %s280_s8  ;;  %s295_s3 = int_to_ptr.hbm [resolvable:$true] %s294_s3 }
  0x30   : > { %1281 = dma.hbm_to_vmem [thread:$0]  (!%p1880_p13), %s281_s8, 2048, %s283_s19, [#allocation12], %s1724_s27, %s1724_s27, %s1725_s12  }
  0x31   : > { %s308_s20 = sshll.u32 %s2135_s5, 4  ;;  %s1507_s5 = sshra.s32 %s267_s30, 4  ;;  %s309_s20 = int_to_ptr.hbm [resolvable:$true] %s308_s20  ;;  %s1508_s5 = int_to_ptr.hbm [resolvable:$true] %s1507_s5 }
  0x32   : > { %1287 = dma.hbm_to_vmem [thread:$0]  (!%p1880_p13), %s309_s20, 2048, %s311_s17, [#allocation15], %s1724_s27, %s1724_s27, %s1725_s12  }
  0x33   : > { %s1509_s24 = scalar_lea.hbm %s1508_s5, 16  ;;  %p1515_p7 = scmp.lt.s32.totalorder %s1508_s5, %s2109_s2 }
  0x34   : > { %p1510_p0 = scmp.ne.s32.totalorder %s1508_s5, %s1509_s24  ;;  %p1516_p9 = scmp.lt.s32.totalorder %s1514_s16, %s1509_s24 }
  0x36   : > { %p1512_p3 = pnand %p1510_p0, %p1421_p12  ;;  %p1517_p11 = por %p1516_p9, %p1515_p7 }
  0x38   : > { %p1513_p5 = pneg %p1512_p3 }
  0x3a   : > { %p1518_p6 = pnand %p1517_p11, %p1513_p5 }
  0x3c   : > { %1521 = shalt.err (!%p1518_p6)
}
  0x3d   : > { %1278 = dma.hbm_to_vmem [thread:$0]  (!%p1845_p10), %s267_s30, 256, %s269_s1, [#allocation9], %s1724_s27, %s1724_s27, %s1725_s12  }
  0x3e   : > { %s1729_s7 = smov [#allocation13]   ;;  %s322_s17 = sshll.u32 %s2113_s6, 4  ;;  %s323_s17 = int_to_ptr.hbm [resolvable:$true] %s322_s17 }
  0x3f   : > { %s296_s5 = sshll.u32 %s1729_s7, 4  ;;  %s1730_s1 = smov [#allocation16]   ;;  %s297_s5 = int_to_ptr.vmem [resolvable:$true] %s296_s5 }
  0x40   : > { %1284 = dma.hbm_to_vmem [thread:$0]  (!%p1880_p13), %s295_s3, 2048, %s297_s5, [#allocation12], %s1724_s27, %s1724_s27, %s1725_s12  }
  0x41   : > { %s324_s21 = sshll.u32 %s1730_s1, 4  ;;  %s38_s30 = sadd.s32 1, %s1717_s28  ;;  %s325_s21 = int_to_ptr.vmem [resolvable:$true] %s324_s21 }
  0x42   : > { %1290 = dma.hbm_to_vmem [thread:$0]  (!%p1880_p13), %s323_s17, 2048, %s325_s21, [#allocation15], %s1724_s27, %s1724_s27, %s1725_s12  }
  0x43   : > { %p40_p6 = scmp.ge.s32.totalorder %s38_s30, 2  ;;  %s47_s23 = sadd.s32 1, %s1709_s26 }
  0x44   : > { %p54_p10 = scmp.ne.s32.totalorder %s1709_s26, %s1705_s25  ;;  %p55_p12 = scmp.eq.s32.totalorder %s1721_s29, 0 }
  0x45   : > { %s2149_s30 = smov (%p40_p6, %s38_s30), 0  ;;  %p1303_p13 = scmp.lt.s32.totalorder %s1721_s29, 2 }
  0x46   : > { %p1935_p11 = por %p55_p12, %p54_p10  ;;  %p1941_p0 = por %p1812_p2, %p54_p10 }
  0x47   : > { %s42_s18 = ssub.s32 %s1717_s28, %s2149_s30  ;;  %s338_s8 = sand.u32 1, %s1709_s26  }
  0x48   : > { %p45_p3 = scmp.eq.s32.totalorder %s42_s18, 0  ;;  %s1205_s19 = sshll.u32 %s338_s8, 4 }
  0x49   : > { %s1246_s15 = sshll.u32 %s1717_s28, 4  ;;  %s342_s20 = scalar_lea.vmem [#allocation5], %s1205_s19 }
  0x4a   : > { %s1950_s16 = scalar_select %p45_p3, %s1709_s26, %s47_s23  }
  0x4b   : > { %s349_s24 = scalar_lea.hbm %s2107_s0, %s1246_s15  ;;  %s352_s17 = sshll.u32 %s342_s20, 4  ;;  %s353_s17 = int_to_ptr.vmem [resolvable:$true] %s352_s17 }
  0x4c   : > { %s350_s10 = sshll.u32 %s349_s24, 4  ;;  %p1292_p2 = pnand %p1303_p13, %p1935_p11  ;;  %s351_s10 = int_to_ptr.hbm [resolvable:$true] %s350_s10 }
  0x4d   : > { %s339_s1 = scalar_lea.sflag [#allocation6], %s338_s8  ;;  %364 = sbr.rel (%p1830_p8) target bundleno = 1212 (0x4bc), region = 48 }
  0x4e   : > { %1294 = dma.hbm_to_vmem [thread:$0]  (!%p1292_p2), %s351_s10, 256, %s353_s17, %s339_s1, %s1724_s27, %s1724_s27, %s1725_s12  }
  0x4f   : > { %s1964_s21 = sand.u32 (!%p1830_p8), 1, %s1705_s25  }
  0x50   : > { %s1209_s23 = sshll.u32 (!%p1830_p8), %s1964_s21, 4  ;;  %s367_s18 = scalar_lea.sflag (!%p1830_p8), [#allocation6], %s1964_s21 }
  0x51   : > { %s1970_s3 = scalar_lea.vmem (!%p1830_p8), [#allocation5], %s1209_s23 }
  0x52   : > { %1680 = dma.done.wait (%p1818_p4), %s367_s18, 256  }
  0x53   : > { %1682 = vsyncadd (%p1818_p4), %s367_s18, 4294967040 }
  0x54   : > { %1684 = dma.done.wait (%p1818_p4), [#allocation9], 512  }
  0x55   : > { %1686 = vsyncadd (%p1818_p4), [#allocation9], 4294966784 }
  0x56   : > { %1688 = dma.done.wait (%p1808_p1), [#allocation12], 4096  }
  0x57   : > { %1690 = vsyncadd (%p1808_p1), [#allocation12], 4294963200 }
  0x58   : > { %1692 = dma.done.wait (%p1808_p1), [#allocation15], 4096  }
  0x59   : > { %1694 = vsyncadd (%p1808_p1), [#allocation15], 4294963200  ;;  %v457_v0 = vld [vmem:[#allocation13 + $0x78] sm:$0xff]  ;;  %v456_v2 = vld [vmem:[#allocation13 + $0x70] sm:$0xff]  ;;  %s1731_s9 = smov 96   ;;  %vm571_vm0 = vcmask 261120  }
  0x5a   : > { %v541_v1 = vld [vmem:[#allocation11 + $0x78] sm:$0xff]  ;;  %458 = vmatpush.msra.mxu0 %v457_v0  ;;  %v540_v3 = vld [vmem:[#allocation11 + $0x70] sm:$0xff]  ;;  %v455_v4 = vld [vmem:[#allocation13 + $0x68] sm:$0xff]  ;;  %s1732_s11 = smov 64   ;;  %s1733_s12 = smov 32   ;;  %vm607_vm1 = vcmask 130048  }
  0x5b   : > { %542 = vmatpush.msra.mxu2 %v541_v1  ;;  %v539_v5 = vld [vmem:[#allocation11 + $0x68] sm:$0xff]  ;;  %v454_v6 = vld [vmem:[#allocation13 + $0x60] sm:$0xff]  ;;  %v453_v8 = vld [vmem:[#allocation13 + $0x58] sm:$0xff]  ;;  %vm767_vm2 = vcmask 523520   ;;  %vm874_vm3 = vcmask 785920   ;;  %vm981_vm4 = vcmask 1048320  }
  0x5c   : > { %459 = vmatpush.msra.mxu0 %v456_v2  ;;  %v538_v7 = vld [vmem:[#allocation11 + $0x60] sm:$0xff]  ;;  %v537_v9 = vld [vmem:[#allocation11 + $0x58] sm:$0xff]  ;;  %v452_v10 = vld [vmem:[#allocation13 + $0x50] sm:$0xff]  ;;  %s431_s14 = scalar_lea.vmem [#allocation17], %s1209_s23  ;;  %s2138_s19 = sld [smem:[#allocation28_spill]] }
  0x5d   : > { %543 = vmatpush.msra.mxu2 %v540_v3  ;;  %v536_v11 = vld [vmem:[#allocation11 + $0x50] sm:$0xff]  ;;  %v451_v12 = vld [vmem:[#allocation13 + $0x48] sm:$0xff]  ;;  %v450_v14 = vld [vmem:[#allocation13 + $0x40] sm:$0xff]  ;;  %s1042_s7 = sshll.u32 %s431_s14, 4  ;;  %s1028_s24 = scalar_lea.sflag [#allocation7], %s1964_s21  ;;  %s1043_s7 = int_to_ptr.vmem [resolvable:$true] %s1042_s7 }
  0x5e   : > { %460 = vmatpush.msra.mxu0 %v455_v4  ;;  %v535_v13 = vld [vmem:[#allocation11 + $0x48] sm:$0xff]  ;;  %v534_v15 = vld [vmem:[#allocation11 + $0x40] sm:$0xff]  ;;  %v498_v16 = vld [vmem:[#allocation14 + $0x78] sm:$0xff] }
  0x5f   : > { %544 = vmatpush.msra.mxu2 %v539_v5  ;;  %v497_v17 = vld [vmem:[#allocation14 + $0x70] sm:$0xff]  ;;  %v449_v18 = vld [vmem:[#allocation13 + $0x38] sm:$0xff]  ;;  %499 = vmatpush.msra.mxu1 %v498_v16  ;;  %v496_v20 = vld [vmem:[#allocation14 + $0x68] sm:$0xff] }
  0x60   : > { %461 = vmatpush.msra.mxu0 %v454_v6  ;;  %v533_v19 = vld [vmem:[#allocation11 + $0x38] sm:$0xff]  ;;  %v448_v21 = vld [vmem:[#allocation13 + $0x30] sm:$0xff]  ;;  %v495_v23 = vld [vmem:[#allocation14 + $0x60] sm:$0xff] }
  0x61   : > { %545 = vmatpush.msra.mxu2 %v538_v7  ;;  %v532_v22 = vld [vmem:[#allocation11 + $0x30] sm:$0xff]  ;;  %500 = vmatpush.msra.mxu1 %v497_v17  ;;  %v447_v24 = vld [vmem:[#allocation13 + $0x28] sm:$0xff]  ;;  %v494_v26 = vld [vmem:[#allocation14 + $0x58] sm:$0xff] }
  0x62   : > { %462 = vmatpush.msra.mxu0 %v453_v8  ;;  %v531_v25 = vld [vmem:[#allocation11 + $0x28] sm:$0xff]  ;;  %v446_v27 = vld [vmem:[#allocation13 + $0x20] sm:$0xff]  ;;  %v493_v29 = vld [vmem:[#allocation14 + $0x50] sm:$0xff]  ;;  %s1041_s15 = scalar_lea.hbm %s2138_s19, %s1828_s13  ;;  %s1647_s23 = scalar_lea.hbm %s2138_s19, 32 }
  0x63   : > { %546 = vmatpush.msra.mxu2 %v537_v9  ;;  %501 = vmatpush.msra.mxu1 %v496_v20  ;;  %v530_v28 = vld [vmem:[#allocation11 + $0x20] sm:$0xff]  ;;  %v445_v30 = vld [vmem:[#allocation13 + $0x18] sm:$0xff]  ;;  %v492_v32 = vld [vmem:[#allocation14 + $0x48] sm:$0xff]  ;;  %s1044_s5 = sshll.u32 %s1041_s15, 4  ;;  %s1045_s5 = int_to_ptr.hbm [resolvable:$true] %s1044_s5 }
  0x64   : > { %463 = vmatpush.msra.mxu0 %v452_v10  ;;  %v529_v31 = vld [vmem:[#allocation11 + $0x18] sm:$0xff]  ;;  %v444_v33 = vld [vmem:[#allocation13 + $0x10] sm:$0xff]  ;;  %v491_v35 = vld [vmem:[#allocation14 + $0x40] sm:$0xff]  ;;  %s1641_s20 = sshra.s32 %s1045_s5, 4  ;;  %s1642_s20 = int_to_ptr.hbm [resolvable:$true] %s1641_s20 }
  0x65   : > { %547 = vmatpush.msra.mxu2 %v536_v11  ;;  %502 = vmatpush.msra.mxu1 %v495_v23  ;;  %v528_v34 = vld [vmem:[#allocation11 + $0x10] sm:$0xff]  ;;  %v443_v36 = vld [vmem:[#allocation13 + $0x8] sm:$0xff]  ;;  %v490_v38 = vld [vmem:[#allocation14 + $0x38] sm:$0xff]  ;;  %s1643_s17 = scalar_lea.hbm %s1642_s20, 16  ;;  %p1648_p5 = scmp.lt.s32.totalorder %s1642_s20, %s2138_s19 }
  0x66   : > { %464 = vmatpush.msra.mxu0 %v451_v12  ;;  %v527_v37 = vld [vmem:[#allocation11 + $0x8] sm:$0xff]  ;;  %v442_v39 = vld [vmem:[#allocation13] sm:$0xff]  ;;  %v489_v43 = vld [vmem:[#allocation14 + $0x30] sm:$0xff]  ;;  %p1644_p1 = scmp.ne.s32.totalorder %s1642_s20, %s1643_s17  ;;  %p1649_p7 = scmp.lt.s32.totalorder %s1647_s23, %s1643_s17 }
  0x67   : > { %548 = vmatpush.msra.mxu2 %v535_v13  ;;  %503 = vmatpush.msra.mxu1 %v494_v26  ;;  %v526_v40 = vld [vmem:[#allocation11] sm:$0xff]  ;;  %v488_v44 = vld [vmem:[#allocation14 + $0x28] sm:$0xff]  ;;  %v486_v46 = vld [vmem:[#allocation14 + $0x18] sm:$0xff] }
  0x68   : > { %465 = vmatpush.msra.mxu0 %v450_v14  ;;  %v438_v41 = vld [vmem:[#allocation8] sm:$0xff]  ;;  %v439_v47 = vld [vmem:[#allocation8 + $0x8] sm:$0xff]  ;;  %v485_v49 = vld [vmem:[#allocation14 + $0x10] sm:$0xff]  ;;  %p1645_p4 = pnand %p1644_p1, %p1941_p0  ;;  %p1650_p9 = por %p1649_p7, %p1648_p5 }
  0x69   : > { %549 = vmatpush.msra.mxu2 %v534_v15  ;;  %504 = vmatpush.msra.mxu1 %v493_v29  ;;  %v524_v42 = vld [vmem:[%s1970_s3] sm:$0xff]  ;;  %v525_v48 = vld [vmem:[%s1970_s3 + $0x8] sm:$0xff] }
  0x6a   : > { %466 = vmatpush.msra.mxu0 %v449_v18  ;;  %v487_v45 = vld [vmem:[#allocation14 + $0x20] sm:$0xff]  ;;  %v484_v50 = vld [vmem:[#allocation14 + $0x8] sm:$0xff]  ;;  %v440_v52 = vld [vmem:[#allocation10] sm:$0xff]  ;;  %p1646_p8 = pneg %p1645_p4 }
  0x6b   : > { %550 = vmatpush.msra.mxu2 %v533_v19  ;;  %505 = vmatpush.msra.mxu1 %v492_v32  ;;  %v483_v51 = vld [vmem:[#allocation14] sm:$0xff]  ;;  %v441_v53 = vld [vmem:[#allocation10 + $0x8] sm:$0xff] }
  0x6c   : > { %467 = vmatpush.msra.mxu0 %v448_v21  ;;  %p1651_p6 = pnand %p1650_p9, %p1646_p8 }
  0x6d   : > { %551 = vmatpush.msra.mxu2 %v532_v22  ;;  %506 = vmatpush.msra.mxu1 %v491_v35 }
  0x6e   : > { %468 = vmatpush.msra.mxu0 %v447_v24 }
  0x6f   : > { %552 = vmatpush.msra.mxu2 %v531_v25  ;;  %507 = vmatpush.msra.mxu1 %v490_v38 }
  0x70   : > { %469 = vmatpush.msra.mxu0 %v446_v27 }
  0x71   : > { %553 = vmatpush.msra.mxu2 %v530_v28  ;;  %508 = vmatpush.msra.mxu1 %v489_v43 }
  0x72   : > { %470 = vmatpush.msra.mxu0 %v445_v30 }
  0x73   : > { %554 = vmatpush.msra.mxu2 %v529_v31  ;;  %509 = vmatpush.msra.mxu1 %v488_v44 }
  0x74   : > { %471 = vmatpush.msra.mxu0 %v444_v33 }
  0x75   : > { %555 = vmatpush.msra.mxu2 %v528_v34  ;;  %510 = vmatpush.msra.mxu1 %v487_v45 }
  0x76   : > { %472 = vmatpush.msra.mxu0 %v443_v36 }
  0x77   : > { %556 = vmatpush.msra.mxu2 %v527_v37  ;;  %511 = vmatpush.msra.mxu1 %v486_v46 }
  0x78   : > { %473 = vmatpush.msra.mxu0 %v442_v39 }
  0x79   : > { %557 = vmatpush.msra.mxu2 %v526_v40  ;;  %474 = vmatmul.f32.vlgmr.msra.gmra.mxu0 %v438_v41 }
  0x7a   : > { %558 = vmatmul.f32.vlgmr.msra.gmra.mxu2 %v524_v42  ;;  %512 = vmatpush.msra.mxu1 %v485_v49 }
  0x7c   : > { %513 = vmatpush.msra.mxu1 %v484_v50 }
  0x7e   : > { %514 = vmatpush.msra.mxu1 %v483_v51 }
  0x7f   : > { %515 = vmatmul.f32.vlgmr.msra.gmra.mxu1 %v440_v52 }
  0x81   : > { %477 = vmatmul.f32.gmra.mxu0 %v439_v47 }
  0x82   : > { %561 = vmatmul.f32.gmra.mxu2 %v525_v48 }
  0x87   : > { %518 = vmatmul.f32.gmra.mxu1 %v441_v53 }
  0xf6   : > { %v475_v54 = vpop.f32.mrf.mxu0 }
  0xf7   : > { %665 = vrot.lane.b32.xlu1 %v475_v54, %s1731_s9 }
  0xfc   : > { %v516_v60 = vpop.f32.mrf.mxu1 }
  0xfd   : > { %v559_v55 = vpop.f32.mrf.mxu2 }
  0xfe   : > { %v565_v56 = vmul.f32 0.17677669, %v559_v55  ;;  %v478_v57 = vpop.f32.mrf.mxu0 }
  0xff   : > { %667 = vrot.lane.b32.xlu1 %v478_v57, %s1731_s9  ;;  %1215 = vmatpush.xpose.msk.msra.mxu3 %vm571_vm0, %v478_v57 }
 0x100   : > { %661 = vrot.lane.b32.xlu2 %v565_v56, %s1731_s9 }
 0x103   : > { %1216 = vmatpush.xpose.msk.msra.mxu3 %vm571_vm0, %v475_v54 }
 0x104   : > { %v519_v61 = vpop.f32.mrf.mxu1 }
 0x105   : > { %v562_v58 = vpop.f32.mrf.mxu2  ;;  %v1370_v6 = vpack.i.bf16 %v516_v60, %v519_v61 }
 0x106   : > { %v566_v59 = vmul.f32 0.17677669, %v562_v58  ;;  %1217 = vmatmul.msk.f32.vlgmr.msra.gmra.mxu3 %vm571_vm0, %v565_v56 }
 0x107   : > { %646 = vmatpush.msrb.mxu3 %v519_v61 }
 0x108   : > { %776 = vrot.lane.b32.xlu2 %v478_v57, %s1732_s11  ;;  %663 = vrot.lane.b32.xlu1 %v566_v59, %s1731_s9 }
 0x109   : > { %647 = vmatpush.msrb.mxu3 %v516_v60 }
 0x10e   : > { %1218 = vmatmul.msk.f32.gmra.mxu3 %vm571_vm0, %v566_v59 }
 0x110   : > { %770 = vrot.lane.b32.xlu2 %v565_v56, %s1732_s11  ;;  %883 = vrot.lane.b32.xlu1 %v478_v57, %s1733_s12 }
 0x118   : > { %881 = vrot.lane.b32.xlu2 %v475_v54, %s1733_s12  ;;  %877 = vrot.lane.b32.xlu1 %v565_v56, %s1733_s12 }
 0x120   : > { %772 = vrot.lane.b32.xlu2 %v566_v59, %s1732_s11 }
 0x15a   : > { %v662_v62 = vpop.permute.xlu2 %661 }
 0x162   : > { %v777_v63 = vpop.permute.xlu2 %776 }
 0x163   : > { %1227 = vmatpush.xpose.msk.msrb.mxu2 %vm571_vm0, %v777_v63 }
 0x169   : > { %v666_v0 = vpop.permute.xlu1 %665 }
 0x16a   : > { %v771_v11 = vpop.permute.xlu2 %770 }
 0x171   : > { %v668_v1 = vpop.permute.xlu1 %667 }
 0x172   : > { %1221 = vmatpush.xpose.msk.msra.mxu3 %vm571_vm0, %v668_v1  ;;  %v882_v17 = vpop.permute.xlu2 %881 }
 0x176   : > { %1222 = vmatpush.xpose.msk.msra.mxu3 %vm571_vm0, %v666_v0 }
 0x17a   : > { %v664_v9 = vpop.permute.xlu1 %663  ;;  %v773_v20 = vpop.permute.xlu2 %772 }
 0x182   : > { %v884_v16 = vpop.permute.xlu1 %883 }
 0x189   : > { %v601_v2 = vpop.f32.mrf.mxu3 }
 0x18a   : > { %v608_v3 = vsel %vm607_vm1, %v601_v2, -inf  ;;  %v878_v21 = vpop.permute.xlu1 %877 }
 0x18b   : > { %609 = vmax.xlane.f32.xlu0 %v608_v3 }
 0x191   : > { %v604_v4 = vpop.f32.mrf.mxu3 }
 0x192   : > { %v611_v5 = vsel %vm607_vm1, %v604_v4, -inf }
 0x193   : > { %612 = vmax.xlane.f32.xlu0 %v611_v5 }
 0x1a7   : > { %774 = vrot.lane.b32.xlu0 %v475_v54, %s1732_s11 }
 0x1af   : > { %879 = vrot.lane.b32.xlu0 %v566_v59, %s1733_s12 }
 0x1b7   : > { %1371 = vrot.lane.b32.xlu0 %v1370_v6, %s1731_s9 }
 0x1fe   : > { %v610_v7 = vpop.xlane.xlu0 %609 }
 0x1ff   : > { %v614_v8 = vsub.f32 %v601_v2, %v610_v7 }
 0x201   : > { %v616_v10 = vmul.f32 1.442695, %v614_v8 }
 0x203   : > { %1385 = vpow2.f32 %v616_v10 }
 0x206   : > { %v613_v12 = vpop.xlane.xlu0 %612 }
 0x207   : > { %v615_v13 = vsub.f32 %v604_v4, %v613_v12 }
 0x209   : > { %v2012_v14 = vpop.eup %1385  ;;  %v618_v15 = vmul.f32 1.442695, %v615_v13 }
 0x20a   : > { %1219 = vmatmul.msk.f32.vlgmr.msrb.gmra.mxu3 %vm607_vm1, %v2012_v14 }
 0x20b   : > { %1387 = vpow2.f32 %v618_v15  ;;  %1233 = vmatpush.xpose.msk.msrb.mxu3 %vm571_vm0, %v884_v16 }
 0x20f   : > { %1234 = vmatpush.xpose.msk.msrb.mxu3 %vm571_vm0, %v882_v17 }
 0x211   : > { %v2018_v18 = vpop.eup %1387 }
 0x212   : > { %1220 = vmatmul.msk.f32.gmra.mxu3 %vm607_vm1, %v2018_v18  ;;  %v623_v12 = vsel %vm607_vm1, %v2018_v18, 0.0  ;;  %v1000_v18 = vld [vmem:[#allocation16 + $0x70] sm:$0xff] }
 0x219   : > { %v775_v19 = vpop.permute.xlu0 %774 }
 0x21a   : > { %1223 = vmatmul.msk.f32.vlgmr.msra.gmra.mxu3 %vm571_vm0, %v662_v62  ;;  %1228 = vmatpush.xpose.msk.msrb.mxu2 %vm571_vm0, %v775_v19 }
 0x21d   : > { %1229 = vmatmul.msk.f32.vlgmr.msrb.gmra.mxu2 %vm571_vm0, %v771_v11  ;;  %v620_v11 = vsel %vm607_vm1, %v2012_v14, 0.0  ;;  %v1001_v14 = vld [vmem:[#allocation16 + $0x78] sm:$0xff] }
 0x21e   : > { %1002 = vmatpush.msrb.mxu1 %v1001_v14 }
 0x220   : > { %1003 = vmatpush.msrb.mxu1 %v1000_v18 }
 0x221   : > { %v880_v22 = vpop.permute.xlu0 %879 }
 0x222   : > { %1224 = vmatmul.msk.f32.gmra.mxu3 %vm571_vm0, %v664_v9 }
 0x225   : > { %1230 = vmatmul.msk.f32.gmra.mxu2 %vm571_vm0, %v773_v20 }
 0x229   : > { %v1372_v23 = vpop.permute.xlu0 %1371 }
 0x22a   : > { %1235 = vmatmul.msk.f32.vlgmr.msrb.gmra.mxu3 %vm571_vm0, %v878_v21  ;;  %v1373_v24 = vunpack.i.l.bf16 %v1372_v23  ;;  %v1374_v25 = vunpack.i.h.bf16 %v1372_v23 }
 0x22c   : > { %746 = vmatpush.msrb.mxu0 %v1373_v24 }
 0x22e   : > { %747 = vmatpush.msrb.mxu0 %v1374_v25  ;;  %v999_v25 = vld [vmem:[#allocation16 + $0x68] sm:$0xff] }
 0x22f   : > { %1004 = vmatpush.msrb.mxu1 %v999_v25 }
 0x232   : > { %1236 = vmatmul.msk.f32.gmra.mxu3 %vm571_vm0, %v880_v22 }
 0x28d   : > { %v2029_v26 = vpop.f32.mrf.mxu3 }
 0x295   : > { %v2031_v27 = vpop.f32.mrf.mxu3 }
 0x29d   : > { %v694_v28 = vpop.f32.mrf.mxu3 }
 0x29e   : > { %v700_v29 = vsel %vm607_vm1, %v694_v28, -inf }
 0x29f   : > { %701 = vmax.xlane.f32.xlu1 %v700_v29 }
 0x2a0   : > { %v803_v30 = vpop.f32.mrf.mxu2 }
 0x2a1   : > { %v809_v31 = vsel %vm607_vm1, %v803_v30, -inf }
 0x2a2   : > { %810 = vmax.xlane.f32.xlu0 %v809_v31 }
 0x2a5   : > { %v697_v32 = vpop.f32.mrf.mxu3 }
 0x2a6   : > { %v703_v33 = vsel %vm607_vm1, %v697_v32, -inf }
 0x2a7   : > { %704 = vmax.xlane.f32.xlu2 %v703_v33 }
 0x2a8   : > { %v806_v34 = vpop.f32.mrf.mxu2 }
 0x2a9   : > { %v812_v35 = vsel %vm607_vm1, %v806_v34, -inf }
 0x2aa   : > { %813 = vmax.xlane.f32.xlu1 %v812_v35 }
 0x2ad   : > { %v910_v36 = vpop.f32.mrf.mxu3 }
 0x2ae   : > { %v916_v37 = vsel %vm607_vm1, %v910_v36, -inf }
 0x2af   : > { %917 = vmax.xlane.f32.xlu2 %v916_v37 }
 0x2b5   : > { %v913_v38 = vpop.f32.mrf.mxu3 }
 0x2b6   : > { %1381 = vrot.lane.b32.xlu0 %v1370_v6, %s1733_s12  ;;  %v919_v39 = vsel %vm607_vm1, %v913_v38, -inf }
 0x2b7   : > { %920 = vmax.xlane.f32.xlu1 %v919_v39 }
 0x2c7   : > { %1376 = vrot.lane.b32.xlu2 %v1370_v6, %s1732_s11 }
 0x312   : > { %v702_v40 = vpop.xlane.xlu1 %701 }
 0x313   : > { %v706_v41 = vsub.f32 %v694_v28, %v702_v40 }
 0x315   : > { %v708_v42 = vmul.f32 1.442695, %v706_v41  ;;  %v811_v43 = vpop.xlane.xlu0 %810 }
 0x316   : > { %v815_v44 = vsub.f32 %v803_v30, %v811_v43  ;;  %v998_v30 = vld [vmem:[#allocation16 + $0x60] sm:$0xff] }
 0x317   : > { %1389 = vpow2.f32 %v708_v42  ;;  %1005 = vmatpush.msrb.mxu1 %v998_v30 }
 0x318   : > { %v817_v45 = vmul.f32 1.442695, %v815_v44 }
 0x31a   : > { %1391 = vpow2.f32 %v817_v45  ;;  %v705_v46 = vpop.xlane.xlu2 %704 }
 0x31b   : > { %v707_v47 = vsub.f32 %v697_v32, %v705_v46 }
 0x31d   : > { %v1390_v48 = vpop.eup %1389  ;;  %v710_v49 = vmul.f32 1.442695, %v707_v47  ;;  %v814_v50 = vpop.xlane.xlu1 %813 }
 0x31e   : > { %1225 = vmatmul.msk.f32.vlgmr.msrb.gmra.mxu0 %vm607_vm1, %v1390_v48  ;;  %v816_v52 = vsub.f32 %v806_v34, %v814_v50  ;;  %v712_v62 = vsel %vm607_vm1, %v1390_v48, 0.0  ;;  %v996_v50 = vld [vmem:[#allocation16 + $0x50] sm:$0xff] }
 0x31f   : > { %1393 = vpow2.f32 %v710_v49  ;;  %v997_v49 = vld [vmem:[#allocation16 + $0x58] sm:$0xff] }
 0x320   : > { %v1392_v51 = vpop.eup %1391  ;;  %v819_v56 = vmul.f32 1.442695, %v816_v52  ;;  %1006 = vmatpush.msrb.mxu1 %v997_v49  ;;  %v994_v52 = vld [vmem:[#allocation16 + $0x40] sm:$0xff] }
 0x321   : > { %v821_v53 = vsel %vm607_vm1, %v1392_v51, 0.0 }
 0x322   : > { %v918_v54 = vpop.xlane.xlu2 %917  ;;  %822 = vadd.xlane.f32.xlu1 %v821_v53  ;;  %1007 = vmatpush.msrb.mxu1 %v996_v50  ;;  %v992_v53 = vld [vmem:[#allocation16 + $0x30] sm:$0xff] }
 0x323   : > { %v922_v55 = vsub.f32 %v910_v36, %v918_v54  ;;  %v991_v54 = vld [vmem:[#allocation16 + $0x28] sm:$0xff] }
 0x325   : > { %v1394_v57 = vpop.eup %1393  ;;  %v924_v58 = vmul.f32 1.442695, %v922_v55  ;;  %v990_v55 = vld [vmem:[#allocation16 + $0x20] sm:$0xff] }
 0x326   : > { %1226 = vmatmul.msk.f32.gmra.mxu0 %vm607_vm1, %v1394_v57  ;;  %v715_v59 = vsel %vm607_vm1, %v1394_v57, 0.0  ;;  %v988_v57 = vld [vmem:[#allocation16 + $0x10] sm:$0xff] }
 0x327   : > { %1395 = vpow2.f32 %v924_v58  ;;  %716 = vadd.xlane.f32.xlu0 %v715_v59  ;;  %v987_v58 = vld [vmem:[#allocation16 + $0x8] sm:$0xff]  ;;  %v986_v59 = vld [vmem:[#allocation16] sm:$0xff] }
 0x328   : > { %1397 = vpow2.f32 %v819_v56  ;;  %v1382_v60 = vpop.permute.xlu0 %1381  ;;  %v989_v56 = vld [vmem:[#allocation16 + $0x18] sm:$0xff] }
 0x329   : > { %v1383_v61 = vunpack.i.l.bf16 %v1382_v60  ;;  %v1384_v1 = vunpack.i.h.bf16 %v1382_v60 }
 0x32a   : > { %v1377_v63 = vpop.permute.xlu2 %1376  ;;  %v921_v0 = vpop.xlane.xlu1 %920  ;;  %713 = vadd.xlane.f32.xlu1 %v712_v62 }
 0x32b   : > { %v1378_v2 = vunpack.i.l.bf16 %v1377_v63  ;;  %v923_v3 = vsub.f32 %v913_v38, %v921_v0  ;;  %960 = vmatpush.msra.mxu0 %v1383_v61  ;;  %v1379_v5 = vunpack.i.h.bf16 %v1377_v63 }
 0x32d   : > { %v1396_v4 = vpop.eup %1395  ;;  %v926_v6 = vmul.f32 1.442695, %v923_v3  ;;  %853 = vmatpush.msra.mxu2 %v1378_v2  ;;  %961 = vmatpush.msra.mxu0 %v1384_v1 }
 0x32e   : > { %v1398_v7 = vpop.eup %1397  ;;  %1237 = vmatmul.msk.f32.vlgmr.msra.gmra.mxu0 %vm607_vm1, %v1396_v4  ;;  %v928_v8 = vsel %vm607_vm1, %v1396_v4, 0.0 }
 0x32f   : > { %1399 = vpow2.f32 %v926_v6  ;;  %929 = vadd.xlane.f32.xlu2 %v928_v8  ;;  %854 = vmatpush.msra.mxu2 %v1379_v5  ;;  %v824_v9 = vsel %vm607_vm1, %v1398_v7, 0.0 }
 0x330   : > { %1231 = vmatmul.msk.f32.vlgmr.msra.gmra.mxu2 %vm607_vm1, %v1392_v51  ;;  %v995_v51 = vld [vmem:[#allocation16 + $0x48] sm:$0xff] }
 0x331   : > { %1008 = vmatpush.msrb.mxu1 %v995_v51 }
 0x332   : > { %825 = vadd.xlane.f32.xlu1 %v824_v9 }
 0x333   : > { %1009 = vmatpush.msrb.mxu1 %v994_v52 }
 0x335   : > { %v1400_v10 = vpop.eup %1399 }
 0x336   : > { %1238 = vmatmul.msk.f32.gmra.mxu0 %vm607_vm1, %v1400_v10  ;;  %v931_v13 = vsel %vm607_vm1, %v1400_v10, 0.0 }
 0x338   : > { %1232 = vmatmul.msk.f32.gmra.mxu2 %vm607_vm1, %v1398_v7 }
 0x33a   : > { %621 = vadd.xlane.f32.xlu1 %v620_v11 }
 0x342   : > { %624 = vadd.xlane.f32.xlu1 %v623_v12 }
 0x34a   : > { %932 = vadd.xlane.f32.xlu1 %v931_v13 }
 0x395   : > { %v823_v15 = vpop.xlane.xlu1 %822 }
 0x39a   : > { %v717_v20 = vpop.xlane.xlu0 %716 }
 0x39b   : > { %v749_v16 = vpop.f32.mrf.mxu0 }
 0x39d   : > { %v714_v17 = vpop.xlane.xlu1 %713 }
 0x39e   : > { %1401 = vrcp.f32 %v714_v17 }
 0x3a2   : > { %v930_v19 = vpop.xlane.xlu2 %929 }
 0x3a3   : > { %v752_v21 = vpop.f32.mrf.mxu0  ;;  %1403 = vrcp.f32 %v930_v19 }
 0x3a4   : > { %v1402_v22 = vpop.eup %1401  ;;  %1405 = vrcp.f32 %v717_v20 }
 0x3a5   : > { %v826_v23 = vpop.xlane.xlu1 %825  ;;  %v757_v24 = vmul.f32 %v1402_v22, %v749_v16  ;;  %1407 = vrcp.f32 %v823_v15 }
 0x3a7   : > { %761 = vrot.lane.b32.xlu1 %v757_v24, %s1733_s12 }
 0x3a9   : > { %v1404_v28 = vpop.eup %1403 }
 0x3aa   : > { %v1406_v31 = vpop.eup %1405 }
 0x3ab   : > { %v963_v29 = vpop.f32.mrf.mxu0  ;;  %v758_v33 = vmul.f32 %v1406_v31, %v752_v21  ;;  %v1408_v35 = vpop.eup %1407 }
 0x3ac   : > { %v971_v32 = vmul.f32 %v1404_v28, %v963_v29 }
 0x3ad   : > { %v622_v34 = vpop.xlane.xlu1 %621 }
 0x3ae   : > { %1409 = vrcp.f32 %v622_v34  ;;  %975 = vrot.lane.b32.xlu0 %v971_v32, %s1731_s9 }
 0x3af   : > { %763 = vrot.lane.b32.xlu1 %v758_v33, %s1733_s12  ;;  %1411 = vrcp.f32 %v826_v23 }
 0x3b3   : > { %v856_v36 = vpop.f32.mrf.mxu2 }
 0x3b4   : > { %v1410_v37 = vpop.eup %1409  ;;  %v864_v38 = vmul.f32 %v1408_v35, %v856_v36 }
 0x3b5   : > { %v657_v39 = vmul.f32 %v1410_v37, %v2029_v26  ;;  %v625_v40 = vpop.xlane.xlu1 %624  ;;  %v1412_v41 = vpop.eup %1411 }
 0x3b6   : > { %1413 = vrcp.f32 %v625_v40  ;;  %868 = vrot.lane.b32.xlu2 %v864_v38, %s1732_s11  ;;  %v966_v26 = vpop.f32.mrf.mxu0 }
 0x3b7   : > { %659 = vst.msk [vmem:[#allocation4] sm:$0xff] %vm571_vm0, %v657_v39 }
 0x3bb   : > { %v859_v42 = vpop.f32.mrf.mxu2 }
 0x3bc   : > { %v1414_v43 = vpop.eup %1413  ;;  %v865_v44 = vmul.f32 %v1412_v41, %v859_v42 }
 0x3bd   : > { %v658_v45 = vmul.f32 %v1414_v43, %v2031_v27  ;;  %v933_v46 = vpop.xlane.xlu1 %932  ;;  %v993_v27 = vld [vmem:[#allocation16 + $0x38] sm:$0xff] }
 0x3be   : > { %1415 = vrcp.f32 %v933_v46  ;;  %870 = vrot.lane.b32.xlu0 %v865_v44, %s1732_s11  ;;  %1010 = vmatpush.msrb.mxu1 %v993_v27 }
 0x3bf   : > { %660 = vst.msk [vmem:[#allocation4 + $0x8] sm:$0xff] %vm571_vm0, %v658_v45 }
 0x3c0   : > { %1011 = vmatpush.msrb.mxu1 %v992_v53 }
 0x3c2   : > { %1012 = vmatpush.msrb.mxu1 %v991_v54 }
 0x3c4   : > { %v1416_v47 = vpop.eup %1415  ;;  %1013 = vmatpush.msrb.mxu1 %v990_v55 }
 0x3c5   : > { %v972_v48 = vmul.f32 %v1416_v47, %v966_v26 }
 0x3c6   : > { %1014 = vmatpush.msrb.mxu1 %v989_v56 }
 0x3c7   : > { %977 = vrot.lane.b32.xlu2 %v972_v48, %s1731_s9 }
 0x3c8   : > { %1015 = vmatpush.msrb.mxu1 %v988_v57 }
 0x3ca   : > { %1016 = vmatpush.msrb.mxu1 %v987_v58 }
 0x3cc   : > { %1017 = vmatpush.msrb.mxu1 %v986_v59 }
 0x410   : > { %v869_v61 = vpop.permute.xlu2 %868 }
 0x419   : > { %v762_v60 = vpop.permute.xlu1 %761 }
 0x41a   : > { %768 = vst.msk [vmem:[#allocation4] sm:$0xff] %vm767_vm2, %v762_v60 }
 0x41b   : > { %875 = vst.msk [vmem:[#allocation4] sm:$0xff] %vm874_vm3, %v869_v61 }
 0x420   : > { %v976_v62 = vpop.permute.xlu0 %975 }
 0x421   : > { %982 = vst.msk [vmem:[#allocation4] sm:$0xff] %vm981_vm4, %v976_v62  ;;  %v764_v63 = vpop.permute.xlu1 %763  ;;  %v978_v2 = vpop.permute.xlu2 %977 }
 0x422   : > { %769 = vst.msk [vmem:[#allocation4 + $0x8] sm:$0xff] %vm767_vm2, %v764_v63 }
 0x428   : > { %v984_v0 = vld [vmem:[#allocation4] sm:$0xff] }
 0x429   : > { %1018 = vmatmul.f32.vlgmr.msrb.gmra.mxu1 %v984_v0 }
 0x430   : > { %v871_v1 = vpop.permute.xlu0 %870 }
 0x431   : > { %876 = vst.msk [vmem:[#allocation4 + $0x8] sm:$0xff] %vm874_vm3, %v871_v1 }
 0x432   : > { %983 = vst.msk [vmem:[#allocation4 + $0x8] sm:$0xff] %vm981_vm4, %v978_v2 }
 0x439   : > { %v985_v3 = vld [vmem:[#allocation4 + $0x8] sm:$0xff] }
 0x43a   : > { %1021 = vmatmul.f32.gmra.mxu1 %v985_v3 }
 0x4a6   : > { %v1019_v4 = vpop.f32.mrf.mxu1 }
 0x4a7   : > { %1025 = vst [vmem:[%s431_s14] sm:$0xff] %v1019_v4 }
 0x4b7   : > { %v1022_v5 = vpop.f32.mrf.mxu1 }
 0x4b8   : > { %1026 = vst [vmem:[%s431_s14 + $0x8] sm:$0xff] %v1022_v5 }
 0x4b9   : > { %1654 = shalt.err (!%p1651_p6)
}
 0x4ba   : > { %s1734_s21 = smov 128   ;;  %s1735_s3 = smov 8  }
 0x4bb   : > { %1270 = dma.vmem_to_hbm [thread:$0]  (%p1941_p0), %s1043_s7, 256, %s1045_s5, %s1028_s24, %s1734_s21, %s1734_s21, %s1735_s3  }
 0x4bc PF: > { %s2139_s9 = sld [smem:[#allocation23_spill]]  ;;  %p2142_p12 = scmp.ge.s32.totalorder %s1721_s29, 2 }
 0x4bd   : > { %s2140_s11 = sld [smem:[#allocation24_spill]] }
 0x4c2   : > { %s1059_s12 = sand.u32 1, %s2139_s9  }
 0x4c3   : > { %p2141_p10 = scmp.ne.s32.totalorder %s2140_s11, 0  ;;  %s1060_s14 = scalar_lea.sflag [#allocation7], %s1059_s12 }
 0x4c5   : > { %p1296_p11 = pnand %p2142_p12, %p2141_p10 }
 0x4c7   : > { %p1297_p13 = pneg %p1296_p11 }
 0x4c9   : > { %1696 = dma.done.wait (%p1297_p13), %s1060_s14, 256  }
 0x4ca   : > { %1698 = vsyncadd (%p1297_p13), %s1060_s14, 4294967040  ;;  %s26_s29 = sadd.s32 1, %s1721_s29   ;;  %s2143_s24 = smov %s1705_s25 }
 0x4cb   : > { %p23_p3 = scmp.ge.s32.totalorder %s26_s29, 4   ;;  %s2144_s25 = smov %s1709_s26 }
 0x4cc   : > { %s2145_s26 = smov %s1950_s16  ;;  %s2146_s27 = smov %s1717_s28 }
 0x4cd   : > { %s2147_s28 = smov %s2149_s30  ;;  %25 = sbr.rel (!%p23_p3) target bundleno = 14 (0xe), region = 123 }
 0x4d2   :  { %1066 = vsyncpa [#allocation6], 1 }
 0x4d3   :  { %1068 = vsyncpa [#allocation6 + $0x1], 1 }
 0x4d4   :  { %1069 = vsyncpa [#allocation9], 1 }
 0x4d5   :  { %1070 = vsyncpa [#allocation12], 1 }
 0x4d6   :  { %1071 = vsyncpa [#allocation15], 1 }
 0x4d7   :  { %1072 = vsyncpa [#allocation7], 1 }
 0x4d8   :  { %1074 = vsyncpa [#allocation7 + $0x1], 1 }

</bundles_post_ra>
